<compile_context>
chip_gen: v6e
topology: v6e:2x2x1
jax: 0.10.0
libtpu: 0.0.40
codegen_flags: <defaults>
</compile_context>

<pallas_src>
from functools import partial

import jax
import jax.numpy as jnp
from jax.experimental import pallas as pl
from jax.experimental.pallas import tpu as pltpu

EPS = 1e-12  # ParamGNorm adds 1e-12 to the std (not to the variance).


# ------------------------------- Pallas kernels -------------------------------

def _gnorm_channel_kernel(x_ref, g_ref, b_ref, o_ref, *, inv_nm1):
    """AxTrans=False: block (TB, C, THW) of the (B, C, H*W) view; reduce over C."""
    x = x_ref[...].astype(jnp.float32)                       # (TB, C, T)
    mu = jnp.mean(x, axis=1, keepdims=True)                  # (TB, 1, T)
    d = x - mu
    var = jnp.sum(d * d, axis=1, keepdims=True) * inv_nm1    # unbiased variance
    inv = 1.0 / (jnp.sqrt(var) + EPS)                        # eps added to std
    g = g_ref[...][:, None, :]                               # (1, 1, T)
    b = b_ref[...][:, None, :]
    scale = g * inv                                          # (TB, 1, T)
    shift = b - mu * scale                                   # fused scale/shift
    o_ref[...] = (x * scale + shift).astype(o_ref.dtype)


def _gnorm_lastdim_kernel(x_ref, g_ref, b_ref, o_ref, *, inv_nm1):
    """AxTrans=True: block (TB, TN, D); reduce over the last (lane) axis."""
    x = x_ref[...].astype(jnp.float32)                       # (TB, TN, D)
    mu = jnp.mean(x, axis=-1, keepdims=True)                 # (TB, TN, 1)
    d = x - mu
    var = jnp.sum(d * d, axis=-1, keepdims=True) * inv_nm1
    inv = 1.0 / (jnp.sqrt(var) + EPS)
    g = g_ref[...][None, :, :]                               # (1, TN, 1)
    b = b_ref[...][None, :, :]
    scale = g * inv
    shift = b - mu * scale
    o_ref[...] = (x * scale + shift).astype(o_ref.dtype)


# ------------------------------ budget / tiling --------------------------------

def _vmem_budget_bytes():
    """Per-generation VMEM budgets (scoped limit, per-block element budget)."""
    cap = 128 * 1024 * 1024  # v5e/v6e physical; v7x reports 64 MiB
    try:
        info = pltpu.get_tpu_info()
        c = getattr(info, "vmem_capacity_bytes", None)
        if c:
            cap = int(c)
    except Exception:
        pass
    # Scoped limit: ~3/4 of physical, capped at 96 MiB (v7x -> 48 MiB).
    vmem_limit = min((cap * 3) // 4, 96 * 1024 * 1024)
    # Double-buffered in+out blocks plus f32 in-body temporaries must fit in half.
    block_budget = vmem_limit // 2
    return vmem_limit, block_budget


def _floor_multiple(x, align):
    return max(align, (x // align) * align)


def _inv_nm1(n):
    if n <= 1:
        # torch.std (unbiased) would return NaN and poison the whole output.
        raise ValueError("ParamGNorm: reduction axis must have size > 1.")
    return 1.0 / (n - 1)


# --------------------------------- wrapper -------------------------------------

def param_gnorm(x, gamma=None, beta=None, *, ax_trans=False):
    """Pallas implementation of ParamGNorm.forward.

    Pass gamma=None / beta=None for the param=False behaviour.
    Output dtype == input dtype; all statistics are computed in f32.
    """
    vmem_limit, block_budget = _vmem_budget_bytes()
    itemsize = x.dtype.itemsize
    # bytes/element: double-buffered in+out blocks (4*itemsize) + f32 body temps.
    per_elem = 4 * itemsize + 12
    compiler_params = pltpu.CompilerParams(
        dimension_semantics=("parallel", "parallel"),
        vmem_limit_bytes=vmem_limit,
    )

    if ax_trans:
        b, n, d = x.shape
        if gamma is None:
            gamma = jnp.ones((1, n, 1), jnp.float32)
        if beta is None:
            beta = jnp.zeros((1, n, 1), jnp.float32)
        g2 = gamma.reshape(n, 1).astype(jnp.float32)
        b2 = beta.reshape(n, 1).astype(jnp.float32)

        align = max(8, 32 // itemsize)            # 8 for f32, 16 for bf16
        max_elems = max(block_budget // per_elem, align * d)
        if n * d <= max_elems:
            tn = n                                # full dim (always legal)
        else:
            tn = min(n, _floor_multiple(max_elems // d, align))
        num_n = pl.cdiv(n, tn)
        tb = max(1, min(b, max_elems // (tn * d)))
        if num_n == 1 and b > 1:
            tb = min(tb, pl.cdiv(b, 2))           # keep >= 2 grid steps (v7x)
        num_b = pl.cdiv(b, tb)

        x_spec = pl.BlockSpec((tb, tn, d), lambda j, i: (i, j, 0))
        g_spec = pl.BlockSpec((tn, 1), lambda j, i: (j, 0))  # constant over batch

        cost = pl.CostEstimate(
            flops=int(8 * x.size),
            transcendentals=int(b * n),
            bytes_accessed=int(2 * x.size * itemsize + 8 * n),
        )
        return pl.pallas_call(
            partial(_gnorm_lastdim_kernel, inv_nm1=_inv_nm1(d)),
            out_shape=jax.ShapeDtypeStruct((b, n, d), x.dtype),
            grid=(num_n, num_b),
            in_specs=[x_spec, g_spec, g_spec],
            out_specs=x_spec,
            compiler_params=compiler_params,
            cost_estimate=cost,
        )(x, g2, b2)

    # AxTrans=False: normalize over the channel dim of an NCHW tensor.
    b, c, h, w = x.shape
    hw = h * w
    xf = x.reshape(b, c, hw)  # contiguous view, no data movement
    if gamma is None:
        gamma = jnp.ones((1, 1, h, w), jnp.float32)
    if beta is None:
        beta = jnp.zeros((1, 1, h, w), jnp.float32)
    g2 = gamma.reshape(1, hw).astype(jnp.float32)
    b2 = beta.reshape(1, hw).astype(jnp.float32)

    max_elems = max(block_budget // per_elem, c * 128)
    if hw * c <= max_elems:
        thw = hw                                  # full dim (always legal)
    else:
        thw = min(hw, _floor_multiple(max_elems // c, 128))
    num_hw = pl.cdiv(hw, thw)
    tb = max(1, min(b, max_elems // (c * thw)))
    if num_hw == 1 and b > 1:
        tb = min(tb, pl.cdiv(b, 2))               # keep >= 2 grid steps (v7x)
    num_b = pl.cdiv(b, tb)

    x_spec = pl.BlockSpec((tb, c, thw), lambda j, i: (i, 0, j))
    g_spec = pl.BlockSpec((1, thw), lambda j, i: (0, j))      # constant over batch

    cost = pl.CostEstimate(
        flops=int(8 * x.size),
        transcendentals=int(b * hw),
        bytes_accessed=int(2 * x.size * itemsize + 8 * hw),
    )
    out = pl.pallas_call(
        partial(_gnorm_channel_kernel, inv_nm1=_inv_nm1(c)),
        out_shape=jax.ShapeDtypeStruct((b, c, hw), x.dtype),
        grid=(num_hw, num_b),
        in_specs=[x_spec, g_spec, g_spec],
        out_specs=x_spec,
        compiler_params=compiler_params,
        cost_estimate=cost,
    )(xf, g2, b2)
    return out.reshape(b, c, h, w)


# ------------------------------ pure-JAX reference -----------------------------

def param_gnorm_ref(x, gamma, beta, *, ax_trans=False):
    x = x.astype(jnp.float32)
    axis = -1 if ax_trans else 1
    n = x.shape[axis]
    mu = x.mean(axis=axis, keepdims=True)
    sd = jnp.sqrt(jnp.sum(jnp.square(x - mu), axis=axis, keepdims=True) / (n - 1))
    y = (x - mu) / (sd + EPS)
    return gamma.astype(jnp.float32) * y + beta.astype(jnp.float32)


# ----------------------------------- main --------------------------------------

if __name__ == "__main__":
    key = jax.random.PRNGKey(0)
    k1, k2, k3, k4 = jax.random.split(key, 4)

    # ---- AxTrans=False: NCHW input (B=2, C=4, H=W=16), f32 ----
    B, C, H, W = 2, 4, 16, 16
    x = jax.random.normal(k1, (B, C, H, W), dtype=jnp.float32)
    gamma = 0.5 * jnp.ones((1, 1, H, W), jnp.float32)   # ParamGNorm(w=0.5, ...)
    beta = 0.1 * jnp.ones((1, 1, H, W), jnp.float32)    # ParamGNorm(k=0.1, ...)

    out = jax.block_until_ready(
        jax.jit(partial(param_gnorm, ax_trans=False))(x, gamma, beta))
    ref = param_gnorm_ref(x, gamma, beta, ax_trans=False)
    assert out.shape == x.shape and out.dtype == x.dtype
    assert bool(jnp.isfinite(out).all())
    assert bool(jnp.allclose(out, ref, atol=1e-4, rtol=1e-4)), \
        float(jnp.max(jnp.abs(out - ref)))

    # ---- AxTrans=True: (B=2, points=8, D=32), f32 ----
    B2, N, D = 2, 8, 32
    x2 = jax.random.normal(k2, (B2, N, D), dtype=jnp.float32)
    g_ax = jnp.ones((1, N, 1), jnp.float32)              # default w=1.0
    b_ax = jnp.zeros((1, N, 1), jnp.float32)             # default k=0.0

    out2 = jax.block_until_ready(
        jax.jit(partial(param_gnorm, ax_trans=True))(x2, g_ax, b_ax))
    ref2 = param_gnorm_ref(x2, g_ax, b_ax, ax_trans=True)
    assert out2.shape == x2.shape and out2.dtype == x2.dtype
    assert bool(jnp.isfinite(out2).all())
    assert bool(jnp.allclose(out2, ref2, atol=1e-4, rtol=1e-4)), \
        float(jnp.max(jnp.abs(out2 - ref2)))

    # ---- Native bf16 I/O, channel path (param=False: no affine) ----
    xb = jax.random.normal(k3, (2, 64, 16, 16), dtype=jnp.float32).astype(jnp.bfloat16)
    outb = jax.block_until_ready(
        jax.jit(partial(param_gnorm, ax_trans=False))(xb, None, None))
    refb = param_gnorm_ref(xb, jnp.ones((1, 1, 16, 16), jnp.float32),
                           jnp.zeros((1, 1, 16, 16), jnp.float32), ax_trans=False)
    assert outb.dtype == jnp.bfloat16
    assert bool(jnp.isfinite(outb.astype(jnp.float32)).all())
    assert bool(jnp.allclose(outb.astype(jnp.float32), refb, atol=5e-2, rtol=5e-2)), \
        float(jnp.max(jnp.abs(outb.astype(jnp.float32) - refb)))

    # ---- Native bf16 I/O, AxTrans=True path ----
    xb2 = jax.random.normal(k4, (2, 16, 128), dtype=jnp.float32).astype(jnp.bfloat16)
    g_b = jnp.ones((1, 16, 1), jnp.float32)
    b_b = jnp.zeros((1, 16, 1), jnp.float32)
    outb2 = jax.block_until_ready(
        jax.jit(partial(param_gnorm, ax_trans=True))(xb2, g_b, b_b))
    refb2 = param_gnorm_ref(xb2, g_b, b_b, ax_trans=True)
    assert outb2.dtype == jnp.bfloat16
    assert bool(jnp.isfinite(outb2.astype(jnp.float32)).all())
    assert bool(jnp.allclose(outb2.astype(jnp.float32), refb2, atol=5e-2, rtol=5e-2)), \
        float(jnp.max(jnp.abs(outb2.astype(jnp.float32) - refb2)))

    print("KERNEL_OK")
</pallas_src>

<mosaic_0001>
module attributes {stable_mosaic.version = 11 : i64} {
  func.func @_gnorm_channel_kernel(%arg0: i32, %arg1: i32, %arg2: memref<1x4x256xf32, #tpu.memory_space<vmem>>, %arg3: memref<1x256xf32, #tpu.memory_space<vmem>>, %arg4: memref<1x256xf32, #tpu.memory_space<vmem>>, %arg5: memref<1x4x256xf32, #tpu.memory_space<vmem>>) attributes {dimension_semantics = [#tpu.dimension_semantics<parallel>, #tpu.dimension_semantics<parallel>], iteration_bounds = array<i64: 1, 2>, scalar_prefetch = 0 : i64, scratch_operands = 0 : i64, tpu.core_type = #tpu.core_type<tc>, window_params = [{transform_indices = @transform_0, window_bounds = array<i64: 1, 4, 256>}, {transform_indices = @transform_1, window_bounds = array<i64: 1, 256>}, {transform_indices = @transform_2, window_bounds = array<i64: 1, 256>}, {transform_indices = @transform_3, window_bounds = array<i64: 1, 4, 256>}]} {
    %c0 = arith.constant 0 : index
    %c0_0 = arith.constant 0 : index
    %c0_1 = arith.constant 0 : index
    %0 = vector.load %arg2[%c0, %c0_0, %c0_1] : memref<1x4x256xf32, #tpu.memory_space<vmem>>, vector<1x4x256xf32>
    %cst = arith.constant dense<0.000000e+00> : vector<1x256xf32>
    %1 = vector.multi_reduction <add>, %0, %cst [1] : vector<1x4x256xf32> to vector<1x256xf32>
    %2 = vector.shape_cast %1 : vector<1x256xf32> to vector<1x1x256xf32>
    %cst_2 = arith.constant 4.000000e+00 : f32
    %3 = vector.broadcast %cst_2 : f32 to vector<1x1x256xf32>
    %4 = arith.divf %2, %3 : vector<1x1x256xf32>
    %5 = vector.broadcast %4 : vector<1x1x256xf32> to vector<1x4x256xf32>
    %6 = arith.subf %0, %5 : vector<1x4x256xf32>
    %7 = arith.mulf %6, %6 : vector<1x4x256xf32>
    %cst_3 = arith.constant dense<0.000000e+00> : vector<1x256xf32>
    %8 = vector.multi_reduction <add>, %7, %cst_3 [1] : vector<1x4x256xf32> to vector<1x256xf32>
    %9 = vector.shape_cast %8 : vector<1x256xf32> to vector<1x1x256xf32>
    %cst_4 = arith.constant 0.333333343 : f32
    %10 = vector.broadcast %cst_4 : f32 to vector<1x1x256xf32>
    %11 = arith.mulf %9, %10 : vector<1x1x256xf32>
    %12 = math.sqrt %11 : vector<1x1x256xf32>
    %cst_5 = arith.constant 9.99999996E-13 : f32
    %13 = vector.broadcast %cst_5 : f32 to vector<1x1x256xf32>
    %14 = arith.addf %12, %13 : vector<1x1x256xf32>
    %cst_6 = arith.constant 1.000000e+00 : f32
    %15 = vector.broadcast %cst_6 : f32 to vector<1x1x256xf32>
    %16 = arith.divf %15, %14 : vector<1x1x256xf32>
    %c0_7 = arith.constant 0 : index
    %c0_8 = arith.constant 0 : index
    %17 = vector.load %arg3[%c0_7, %c0_8] : memref<1x256xf32, #tpu.memory_space<vmem>>, vector<1x256xf32>
    %18 = vector.shape_cast %17 : vector<1x256xf32> to vector<1x1x256xf32>
    %c0_9 = arith.constant 0 : index
    %c0_10 = arith.constant 0 : index
    %19 = vector.load %arg4[%c0_9, %c0_10] : memref<1x256xf32, #tpu.memory_space<vmem>>, vector<1x256xf32>
    %20 = vector.shape_cast %19 : vector<1x256xf32> to vector<1x1x256xf32>
    %21 = arith.mulf %18, %16 : vector<1x1x256xf32>
    %22 = arith.mulf %4, %21 : vector<1x1x256xf32>
    %23 = arith.subf %20, %22 : vector<1x1x256xf32>
    %24 = vector.broadcast %21 : vector<1x1x256xf32> to vector<1x4x256xf32>
    %25 = arith.mulf %0, %24 : vector<1x4x256xf32>
    %26 = vector.broadcast %23 : vector<1x1x256xf32> to vector<1x4x256xf32>
    %27 = arith.addf %25, %26 : vector<1x4x256xf32>
    %c0_11 = arith.constant 0 : index
    %c0_12 = arith.constant 0 : index
    %c0_13 = arith.constant 0 : index
    %28 = vector.load %arg5[%c0_11, %c0_12, %c0_13] : memref<1x4x256xf32, #tpu.memory_space<vmem>>, vector<1x4x256xf32>
    tpu.vector_store %arg5[%c0_11, %c0_12, %c0_13], %27 {strides = array<i32>} : memref<1x4x256xf32, #tpu.memory_space<vmem>>, vector<1x4x256xf32>,
    return
  }
  func.func @transform_0(%arg0: i32, %arg1: i32) -> (i32, i32, i32) {
    %c0_i32 = arith.constant 0 : i32
    %c0_i32_0 = arith.constant 0 : i32
    return %arg1, %c0_i32, %arg0 : i32, i32, i32
  }
  func.func @transform_1(%arg0: i32, %arg1: i32) -> (i32, i32) {
    %c0_i32 = arith.constant 0 : i32
    %c0_i32_0 = arith.constant 0 : i32
    return %c0_i32, %arg0 : i32, i32
  }
  func.func @transform_2(%arg0: i32, %arg1: i32) -> (i32, i32) {
    %c0_i32 = arith.constant 0 : i32
    %c0_i32_0 = arith.constant 0 : i32
    return %c0_i32, %arg0 : i32, i32
  }
  func.func @transform_3(%arg0: i32, %arg1: i32) -> (i32, i32, i32) {
    %c0_i32 = arith.constant 0 : i32
    %c0_i32_0 = arith.constant 0 : i32
    return %arg1, %c0_i32, %arg0 : i32, i32, i32
  }
}

</mosaic_0001>

<bundles_post_ra>
// kernel: param_gnorm.1
= control target key start
LH: loop header
LB: loop body
LE: loop exit
PB: predicated region body
PF: predicated region fallthrough
CT: control target
= control target key end

     0   :  { %s589_s12 = smov 0   ;;  %s591_s13 = smov 0   ;;  %s646_s0 = inlined_call_operand.vmem [shape: f32[2,4,256], index: 0, kind: input, shape index: {}]   ;;  %s647_s1 = inlined_call_operand.vmem [shape: f32[1,256], index: 1, kind: input, shape index: {}]   ;;  %s648_s2 = inlined_call_operand.vmem [shape: f32[1,256], index: 2, kind: input, shape index: {}]   ;;  %s649_s3 = inlined_call_operand.vmem [shape: f32[2,4,256], index: 3, kind: output, shape index: {}]  }
   0x1   :  { %s593_s14 = smov 0  }
   0x2 LB: > { %s22_s15 = sadd.s32 1, %s562_s13  ;;  %p501_p0 = scmp.ge.s32.totalorder %s566_s14, 1  ;;  %s566_s14 = sphi %s593_s14, %s13_s14   ;;  %s562_s13 = sphi %s591_s13, %s651_s13   ;;  %s558_s12 = sphi %s589_s12, %s650_s12  }
   0x3   : > { %p23_p1 = scmp.ge.s32.totalorder %s22_s15, 2  ;;  %p178_p2 = scmp.lt.s32.totalorder %s566_s14, 3 }
   0x5   : > { %s653_s15 = smov (%p23_p1, %s22_s15), 0  ;;  %p179_p3 = pnand %p501_p0, %p178_p2 }
   0x6   : > { %p219_p4 = scmp.lt.s32.totalorder (!%p179_p3), %s558_s12, 1 }
   0x7   : > { %182 = sbr.rel (%p179_p3) target bundleno = 117 (0x75), region = 32 }
   0xc   : > { %s655_s12 = smov (!%p219_p4, %s558_s12), 1  ;;  %vm252_vm0 = vcmask 1043456   ;;  %v568_v50 = vmov 1966171168   ;;  %v323_v52 = vlaneseq  ;;  %v315_v60 = vld [vmem:[%s647_s1] sm:$0x3] }
   0xd   : > { %s508_s16 = sshll.u32 %s655_s12, 3  ;;  %v321_v51 = vunpack.c.l.s4 %v568_v50 }
   0xe   : > { %s226_s19 = scalar_lea.vmem %s646_s0, %s508_s16  ;;  %v324_v54 = vshrl.u32 %v323_v52, 7  ;;  %s246_s26 = scalar_lea.vmem %s649_s3, %s508_s16 }
   0xf   : > { %v615_v0 = vld [vmem:[%s226_s19] sm:$0xff]  ;;  %v322_v53 = vunpack.c.0.s8 %v321_v51 }
  0x10   : > { %v250_v1 = vcombine.high %v615_v0, %v615_v0  ;;  %v253_v2 = vsel %vm252_vm0, %v615_v0, 0.0  ;;  %v339_v62 = vsub.s32 0, %v324_v54  ;;  %v343_v63 = vsub.s32 1, %v324_v54 }
  0x11   : > { %v254_v3 = vrot.slane %v253_v2, 4  ;;  %v325_v56 = vsub.s32 %v322_v53, %v324_v54 }
  0x12   : > { %v260_v4 = vsel %vm252_vm0, %v250_v1, 0.0 }
  0x13   : > { %v255_v5 = vadd.f32 %v254_v3, %v253_v2  ;;  %v261_v6 = vrot.slane %v260_v4, 4 }
  0x15   : > { %v256_v7 = vrot.slane %v255_v5, 2  ;;  %v262_v8 = vadd.f32 %v261_v6, %v260_v4 }
  0x17   : > { %v257_v9 = vadd.f32 %v256_v7, %v255_v5  ;;  %v263_v10 = vrot.slane %v262_v8, 2 }
  0x19   : > { %v258_v11 = vrot.slane %v257_v9, 1  ;;  %v264_v12 = vadd.f32 %v263_v10, %v262_v8  ;;  %v316_v8 = vld [vmem:[%s648_s2] sm:$0x3] }
  0x1b   : > { %v259_v13 = vadd.f32 %v258_v11, %v257_v9  ;;  %v265_v14 = vrot.slane %v264_v12, 1 }
  0x1d   : > { %v266_v15 = vadd.f32 %v265_v14, %v264_v12  ;;  %v268_v16 = vmul.f32 0.25, %v259_v13 }
  0x1f   : > { %v269_v17 = vmul.f32 0.25, %v266_v15 }
  0x21   : > { %v272_v18 = vcombine.low %v268_v16, %v269_v17 }
  0x23   : > { %v274_v19 = vsub.f32 %v615_v0, %v272_v18 }
  0x25   : > { %v275_v20 = vmul.f32 %v274_v19, %v274_v19 }
  0x27   : > { %v277_v21 = vcombine.high %v275_v20, %v275_v20  ;;  %v279_v22 = vsel %vm252_vm0, %v275_v20, 0.0 }
  0x28   : > { %v280_v23 = vrot.slane %v279_v22, 4 }
  0x29   : > { %v286_v24 = vsel %vm252_vm0, %v277_v21, 0.0 }
  0x2a   : > { %v281_v25 = vadd.f32 %v280_v23, %v279_v22  ;;  %v287_v26 = vrot.slane %v286_v24, 4 }
  0x2c   : > { %v282_v27 = vrot.slane %v281_v25, 2  ;;  %v288_v28 = vadd.f32 %v287_v26, %v286_v24 }
  0x2e   : > { %v283_v29 = vadd.f32 %v282_v27, %v281_v25  ;;  %v289_v30 = vrot.slane %v288_v28, 2 }
  0x30   : > { %v284_v31 = vrot.slane %v283_v29, 1  ;;  %v290_v32 = vadd.f32 %v289_v30, %v288_v28 }
  0x32   : > { %v285_v33 = vadd.f32 %v284_v31, %v283_v29  ;;  %v291_v34 = vrot.slane %v290_v32, 1 }
  0x34   : > { %v292_v35 = vadd.f32 %v291_v34, %v290_v32  ;;  %v293_v36 = vmul.f32 0.33333334, %v285_v33 }
  0x36   : > { %v294_v37 = vmul.f32 0.33333334, %v292_v35  ;;  %536 = vrsqrt.f32 %v293_v36  ;;  %vm297_vm1 = vcmp.eq.f32.partialorder %v293_v36, inf  ;;  %v300_v39 = vand.u32 2147483648, %v293_v36 }
  0x37   : > { %vm299_vm2 = vcmp.eq.f32.partialorder %v293_v36, 0.0 }
  0x38   : > { %538 = vrsqrt.f32 %v294_v37  ;;  %vm304_vm3 = vcmp.eq.f32.partialorder %v294_v37, inf  ;;  %v307_v42 = vand.u32 2147483648, %v294_v37  ;;  %vm306_vm4 = vcmp.eq.f32.partialorder %v294_v37, 0.0 }
  0x43   : > { %v537_v38 = vpop.eup %536 }
  0x44   : > { %v296_v40 = vmul.f32 %v537_v38, %v293_v36 }
  0x45   : > { %v539_v41 = vpop.eup %538 }
  0x46   : > { %v298_v43 = vsel %vm297_vm1, %v293_v36, %v296_v40  ;;  %v303_v44 = vmul.f32 %v539_v41, %v294_v37 }
  0x47   : > { %v301_v45 = vsel %vm299_vm2, %v300_v39, %v298_v43 }
  0x48   : > { %v305_v46 = vsel %vm304_vm3, %v294_v37, %v303_v44  ;;  %v309_v47 = vadd.f32 1e-12, %v301_v45 }
  0x49   : > { %v308_v48 = vsel %vm306_vm4, %v307_v42, %v305_v46 }
  0x4a   : > { %v310_v49 = vadd.f32 1e-12, %v308_v48  ;;  %540 = vrcp.f32 %v309_v47 }
  0x4c   : > { %542 = vrcp.f32 %v310_v49 }
  0x57   : > { %v541_v55 = vpop.eup %540 }
  0x59   : > { %v543_v57 = vpop.eup %542 }
  0x5a   : > { %v319_v58 = vcombine.low %v541_v55, %v543_v57 }
  0x5c   : > { %v326_v59 = vrot.slane %v319_v58, %v325_v56 }
  0x5e   : > { %v333_v61 = vrot.slane %v326_v59, %v325_v56 }
  0x60   : > { %v335_v1 = vmul.f32 %v333_v61, %v315_v60 }
  0x62   : > { %v340_v2 = vrot.slane %v335_v1, %v339_v62  ;;  %v344_v3 = vrot.slane %v335_v1, %v343_v63 }
  0x64   : > { %v347_v4 = vmul.f32 %v340_v2, %v268_v16  ;;  %v348_v5 = vmul.f32 %v344_v3, %v269_v17  ;;  %v368_v10 = vcombine.low %v340_v2, %v344_v3 }
  0x66   : > { %v351_v6 = vcombine.low %v347_v4, %v348_v5  ;;  %v370_v12 = vmul.f32 %v368_v10, %v615_v0 }
  0x68   : > { %v358_v7 = vrot.slane %v351_v6, %v325_v56 }
  0x6a   : > { %v365_v9 = vrot.slane %v358_v7, %v325_v56 }
  0x6c   : > { %v367_v11 = vsub.f32 %v316_v8, %v365_v9 }
  0x6e   : > { %v375_v13 = vrot.slane %v367_v11, %v339_v62  ;;  %v379_v14 = vrot.slane %v367_v11, %v343_v63 }
  0x70   : > { %v380_v15 = vcombine.low %v375_v13, %v379_v14 }
  0x72   : > { %v382_v16 = vadd.f32 %v380_v15, %v370_v12 }
  0x74   : > { %383 = vst [vmem:[%s246_s26] sm:$0xff] %v382_v16 }
  0x75 PF: > { %s13_s14 = sadd.s32 1, %s566_s14   ;;  %s650_s12 = smov %s562_s13 }
  0x76   : > { %p10_p5 = scmp.ge.s32.totalorder %s13_s14, 4   ;;  %s651_s13 = smov %s653_s15 }
  0x78   :  { %12 = sbr.rel (!%p10_p5) target bundleno = 2 (0x2), region = 68 }

</bundles_post_ra>
